<compile_context>
chip_gen: v7x
topology: tpu7x:2x2x1
jax: 0.10.0
libtpu: 0.0.40
codegen_flags: <defaults>
</compile_context>

<pallas_src>
import functools

import jax
import jax.numpy as jnp
from jax.experimental import pallas as pl
from jax.experimental.pallas import tpu as pltpu

_LANE = 128
_SUBLANE = 8
_NEG_BIG = -1e30  # bias for padded class columns -> exp() underflows to 0


def _round_up(n, m):
    return (n + m - 1) // m * m


def mlp_kernel(x_ref, w1_ref, b1_ref, w2_ref, b2_ref, o_ref):
    # fc1 (MXU, f32 accumulate) + bias + ReLU (VPU, f32)
    w1 = w1_ref[...]
    h = jnp.dot(x_ref[...], w1, preferred_element_type=jnp.float32) + b1_ref[...]
    h = jnp.maximum(h, 0.0)
    # fc2 (MXU, f32 accumulate) + bias. Padded class columns get -1e30 from the bias.
    w2 = w2_ref[...]
    z = jnp.dot(h.astype(w2.dtype), w2, preferred_element_type=jnp.float32) + b2_ref[...]
    # Numerically-stable LogSoftmax over the class (lane) axis, all in f32.
    m = jnp.max(z, axis=-1, keepdims=True)
    s = z - m
    lse = jnp.log(jnp.sum(jnp.exp(s), axis=-1, keepdims=True))
    o_ref[...] = (s - lse).astype(o_ref.dtype)


def prepare_params(w1, b1, w2, b2, *, mxu_dtype=jnp.float32):
    """One-time parameter prep (call at parameter-creation time, NOT per forward):
    transpose nn.Linear weights to (in, out), pad every feature dim to a multiple
    of 128 lanes, optionally cast matmul operands to bf16. Biases stay float32."""
    hidden, d_in = w1.shape
    n_cls, _ = w2.shape
    d_in_p = _round_up(d_in, _LANE)
    hid_p = _round_up(hidden, _LANE)
    cls_p = _round_up(n_cls, _LANE)

    w1t = jnp.zeros((d_in_p, hid_p), mxu_dtype).at[:d_in, :hidden].set(
        w1.T.astype(mxu_dtype))
    w2t = jnp.zeros((hid_p, cls_p), mxu_dtype).at[:hidden, :n_cls].set(
        w2.T.astype(mxu_dtype))
    b1p = jnp.zeros((1, hid_p), jnp.float32).at[0, :hidden].set(
        b1.astype(jnp.float32))
    # Padded class columns get a huge negative bias so log-softmax ignores them.
    b2p = jnp.full((1, cls_p), _NEG_BIG, jnp.float32).at[0, :n_cls].set(
        b2.astype(jnp.float32))
    return (w1t, b1p, w2t, b2p), (d_in, n_cls)


@functools.partial(jax.jit, static_argnames=("d_in", "n_cls", "block_b"))
def mlp_forward(x, w1t, b1p, w2t, b2p, *, d_in, n_cls, block_b=512):
    """x: (B, input_size) float32; params from prepare_params."""
    B = x.shape[0]
    d_in_p, hid_p = w1t.shape
    _, cls_p = w2t.shape

    # Batch tile: largest multiple of 8 up to block_b; pad batch to a whole grid.
    tb = min(block_b, _round_up(B, _SUBLANE))
    b_pad = _round_up(B, tb)

    # Pad x (zeros in the padded contraction columns contribute nothing) and cast
    # to the MXU input dtype (bf16 on v6e/v7x if requested; f32 otherwise).
    xp = jnp.zeros((b_pad, d_in_p), jnp.float32).at[:B, :d_in].set(
        x.astype(jnp.float32)).astype(w1t.dtype)

    itemsize = jnp.dtype(w1t.dtype).itemsize
    cost = pl.CostEstimate(
        flops=2 * b_pad * (d_in_p * hid_p + hid_p * cls_p),
        transcendentals=b_pad * (cls_p + 1),
        bytes_accessed=(b_pad * d_in_p * itemsize        # x
                        + d_in_p * hid_p * itemsize      # W1
                        + hid_p * cls_p * itemsize       # W2
                        + (hid_p + cls_p) * 4            # biases
                        + b_pad * cls_p * 4),            # out
    )

    out = pl.pallas_call(
        mlp_kernel,
        out_shape=jax.ShapeDtypeStruct((b_pad, cls_p), jnp.float32),
        grid_spec=pltpu.PrefetchScalarGridSpec(
            num_scalar_prefetch=0,
            grid=(b_pad // tb,),
            in_specs=[
                pl.BlockSpec((tb, d_in_p), lambda i: (i, 0)),      # x tile (pipelined)
                pl.BlockSpec((d_in_p, hid_p), lambda i: (0, 0)),   # W1 resident
                pl.BlockSpec((1, hid_p), lambda i: (0, 0)),        # b1 resident
                pl.BlockSpec((hid_p, cls_p), lambda i: (0, 0)),    # W2 resident
                pl.BlockSpec((1, cls_p), lambda i: (0, 0)),        # b2 resident
            ],
            out_specs=pl.BlockSpec((tb, cls_p), lambda i: (i, 0)),  # lane-dense store
        ),
        compiler_params=pltpu.CompilerParams(
            dimension_semantics=("parallel",)),  # megacore-shardable batch loop
        cost_estimate=cost,
    )(xp, w1t, b1p, w2t, b2p)

    # Strip batch/class padding (layout plumbing only).
    return out[:B, :n_cls].astype(x.dtype)


if __name__ == "__main__":
    # Small shapes implied by the forward: x is (batch, input_size).
    batch, input_size, hidden_size, output_size = 8, 32, 64, 16

    key = jax.random.PRNGKey(0)
    kx, k1, kb1, k2, kb2 = jax.random.split(key, 5)

    x = jax.random.normal(kx, (batch, input_size), dtype=jnp.float32)

    # Deterministic parameter init (uniform, same bounds as nn.Linear default).
    bound1 = 1.0 / (input_size ** 0.5)
    w1 = jax.random.uniform(k1, (hidden_size, input_size), jnp.float32, -bound1, bound1)
    b1 = jax.random.uniform(kb1, (hidden_size,), jnp.float32, -bound1, bound1)
    bound2 = 1.0 / (hidden_size ** 0.5)
    w2 = jax.random.uniform(k2, (output_size, hidden_size), jnp.float32, -bound2, bound2)
    b2 = jax.random.uniform(kb2, (output_size,), jnp.float32, -bound2, bound2)

    # Pure-JAX reference.
    h_ref = jnp.maximum(x @ w1.T + b1, 0.0)
    z_ref = h_ref @ w2.T + b2
    ref = jax.nn.log_softmax(z_ref, axis=1)

    # f32 MXU path (exact-ish): prepare params once, run the kernel.
    params_f32, (d_in, n_cls) = prepare_params(w1, b1, w2, b2, mxu_dtype=jnp.float32)
    out = mlp_forward(x, *params_f32, d_in=d_in, n_cls=n_cls)
    jax.block_until_ready(out)
    assert out.shape == (batch, output_size)
    assert jnp.allclose(out, ref, atol=1e-5, rtol=1e-5)

    # bf16 MXU-input path (v6e/v7x throughput win; elementwise stays f32).
    params_bf16, _ = prepare_params(w1, b1, w2, b2, mxu_dtype=jnp.bfloat16)
    out_bf16 = mlp_forward(x, *params_bf16, d_in=d_in, n_cls=n_cls)
    jax.block_until_ready(out_bf16)
    assert out_bf16.shape == (batch, output_size)
    assert bool(jnp.all(jnp.isfinite(out_bf16)))
    assert float(jnp.max(jnp.abs(out_bf16.astype(jnp.float32) - ref))) < 0.25

    print("KERNEL_OK")
</pallas_src>

<mosaic_0001>
module attributes {stable_mosaic.version = 11 : i64} {
  func.func @mlp_kernel(%arg0: i32, %arg1: memref<8x128xf32, #tpu.memory_space<vmem>>, %arg2: memref<128x128xf32, #tpu.memory_space<vmem>>, %arg3: memref<1x128xf32, #tpu.memory_space<vmem>>, %arg4: memref<128x128xf32, #tpu.memory_space<vmem>>, %arg5: memref<1x128xf32, #tpu.memory_space<vmem>>, %arg6: memref<8x128xf32, #tpu.memory_space<vmem>>) attributes {dimension_semantics = [#tpu.dimension_semantics<parallel>], iteration_bounds = array<i64: 1>, scalar_prefetch = 0 : i64, scratch_operands = 0 : i64, tpu.core_type = #tpu.core_type<tc>, window_params = [{transform_indices = @transform_0, window_bounds = array<i64: 8, 128>}, {pipeline_mode = #tpu.pipeline_mode<synchronous>, transform_indices = @transform_1, window_bounds = array<i64: 128, 128>}, {pipeline_mode = #tpu.pipeline_mode<synchronous>, transform_indices = @transform_2, window_bounds = array<i64: 1, 128>}, {pipeline_mode = #tpu.pipeline_mode<synchronous>, transform_indices = @transform_3, window_bounds = array<i64: 128, 128>}, {pipeline_mode = #tpu.pipeline_mode<synchronous>, transform_indices = @transform_4, window_bounds = array<i64: 1, 128>}, {transform_indices = @transform_5, window_bounds = array<i64: 8, 128>}]} {
    %c0 = arith.constant 0 : index
    %c0_0 = arith.constant 0 : index
    %0 = vector.load %arg2[%c0, %c0_0] : memref<128x128xf32, #tpu.memory_space<vmem>>, vector<128x128xf32>
    %c0_1 = arith.constant 0 : index
    %c0_2 = arith.constant 0 : index
    %1 = vector.load %arg1[%c0_1, %c0_2] : memref<8x128xf32, #tpu.memory_space<vmem>>, vector<8x128xf32>
    %cst = arith.constant dense<0.000000e+00> : vector<8x128xf32>
    %2 = tpu.matmul %1, %0, %cst {dimension_numbers = #tpu.dot_dimension_numbers<[1], [0], [0], [1], [0, 0, 1, 1], [], []>} : vector<8x128xf32>, vector<128x128xf32>, vector<8x128xf32> -> vector<8x128xf32>
    %c0_3 = arith.constant 0 : index
    %c0_4 = arith.constant 0 : index
    %3 = vector.load %arg3[%c0_3, %c0_4] : memref<1x128xf32, #tpu.memory_space<vmem>>, vector<1x128xf32>
    %4 = vector.broadcast %3 : vector<1x128xf32> to vector<8x128xf32>
    %5 = arith.addf %2, %4 : vector<8x128xf32>
    %cst_5 = arith.constant 0.000000e+00 : f32
    %6 = vector.broadcast %cst_5 : f32 to vector<8x128xf32>
    %7 = arith.maximumf %5, %6 : vector<8x128xf32>
    %c0_6 = arith.constant 0 : index
    %c0_7 = arith.constant 0 : index
    %8 = vector.load %arg4[%c0_6, %c0_7] : memref<128x128xf32, #tpu.memory_space<vmem>>, vector<128x128xf32>
    %cst_8 = arith.constant dense<0.000000e+00> : vector<8x128xf32>
    %9 = tpu.matmul %7, %8, %cst_8 {dimension_numbers = #tpu.dot_dimension_numbers<[1], [0], [0], [1], [0, 0, 1, 1], [], []>} : vector<8x128xf32>, vector<128x128xf32>, vector<8x128xf32> -> vector<8x128xf32>
    %c0_9 = arith.constant 0 : index
    %c0_10 = arith.constant 0 : index
    %10 = vector.load %arg5[%c0_9, %c0_10] : memref<1x128xf32, #tpu.memory_space<vmem>>, vector<1x128xf32>
    %11 = vector.broadcast %10 : vector<1x128xf32> to vector<8x128xf32>
    %12 = arith.addf %9, %11 : vector<8x128xf32>
    %cst_11 = arith.constant dense<0xFF800000> : vector<8xf32>
    %13 = vector.multi_reduction <maximumf>, %12, %cst_11 [1] : vector<8x128xf32> to vector<8xf32>
    %14 = vector.shape_cast %13 : vector<8xf32> to vector<8x1xf32>
    %15 = vector.broadcast %14 : vector<8x1xf32> to vector<8x128xf32>
    %16 = arith.subf %12, %15 : vector<8x128xf32>
    %17 = math.exp %16 : vector<8x128xf32>
    %cst_12 = arith.constant dense<0.000000e+00> : vector<8xf32>
    %18 = vector.multi_reduction <add>, %17, %cst_12 [1] : vector<8x128xf32> to vector<8xf32>
    %19 = vector.shape_cast %18 : vector<8xf32> to vector<8x1xf32>
    %20 = math.log %19 : vector<8x1xf32>
    %21 = vector.broadcast %20 : vector<8x1xf32> to vector<8x128xf32>
    %22 = arith.subf %16, %21 : vector<8x128xf32>
    %c0_13 = arith.constant 0 : index
    %c0_14 = arith.constant 0 : index
    %23 = vector.load %arg6[%c0_13, %c0_14] : memref<8x128xf32, #tpu.memory_space<vmem>>, vector<8x128xf32>
    tpu.vector_store %arg6[%c0_13, %c0_14], %22 {strides = array<i32>} : memref<8x128xf32, #tpu.memory_space<vmem>>, vector<8x128xf32>,
    return
  }
  func.func @transform_0(%arg0: i32) -> (i32, i32) {
    %c0_i32 = arith.constant 0 : i32
    %c0_i32_0 = arith.constant 0 : i32
    return %arg0, %c0_i32 : i32, i32
  }
  func.func @transform_1(%arg0: i32) -> (i32, i32) {
    %c0_i32 = arith.constant 0 : i32
    %c0_i32_0 = arith.constant 0 : i32
    %c0_i32_1 = arith.constant 0 : i32
    return %c0_i32, %c0_i32_0 : i32, i32
  }
  func.func @transform_2(%arg0: i32) -> (i32, i32) {
    %c0_i32 = arith.constant 0 : i32
    %c0_i32_0 = arith.constant 0 : i32
    %c0_i32_1 = arith.constant 0 : i32
    return %c0_i32, %c0_i32_0 : i32, i32
  }
  func.func @transform_3(%arg0: i32) -> (i32, i32) {
    %c0_i32 = arith.constant 0 : i32
    %c0_i32_0 = arith.constant 0 : i32
    %c0_i32_1 = arith.constant 0 : i32
    return %c0_i32, %c0_i32_0 : i32, i32
  }
  func.func @transform_4(%arg0: i32) -> (i32, i32) {
    %c0_i32 = arith.constant 0 : i32
    %c0_i32_0 = arith.constant 0 : i32
    %c0_i32_1 = arith.constant 0 : i32
    return %c0_i32, %c0_i32_0 : i32, i32
  }
  func.func @transform_5(%arg0: i32) -> (i32, i32) {
    %c0_i32 = arith.constant 0 : i32
    %c0_i32_0 = arith.constant 0 : i32
    return %arg0, %c0_i32 : i32, i32
  }
}

</mosaic_0001>

<bundles_post_ra>
// kernel: mlp_forward.1
= control target key start
LH: loop header
LB: loop body
LE: loop exit
PB: predicated region body
PF: predicated region fallthrough
CT: control target
= control target key end

     0   :  { %10 = vsyncpa [#allocation3], 0  ;;  %s601_s0 = inlined_call_operand.vmem [shape: f32[8,128], index: 0, kind: input, shape index: {}]   ;;  %s602_s1 = inlined_call_operand.hbm [shape: f32[128,128], index: 1, kind: input, shape index: {}]   ;;  %s603_s2 = inlined_call_operand.vmem [shape: f32[1,128], index: 2, kind: input, shape index: {}]   ;;  %s604_s3 = inlined_call_operand.hbm [shape: f32[128,128], index: 3, kind: input, shape index: {}]   ;;  %s605_s4 = inlined_call_operand.vmem [shape: f32[1,128], index: 4, kind: input, shape index: {}]   ;;  %s606_s5 = inlined_call_operand.hbm [shape: f32[8,128], index: 5, kind: output, shape index: {}]  }
   0x1   :  { %11 = vsyncpa [#allocation6], 0 }
   0x2   :  { %12 = vsyncpa [#allocation4], 0  ;;  %s502_s18 = smov [#allocation2]   ;;  %s430_s22 = scalar_lea.hbm %s602_s1, 2048 }
   0x3   :  { %s20_s19 = sshll.u32 %s502_s18, 4  ;;  %p431_p0 = scmp.ne.s32.totalorder %s602_s1, %s430_s22  ;;  %s21_s19 = int_to_ptr.vmem [resolvable:$true] %s20_s19 }
   0x4   :  { %p434_p1 = scmp.lt.u32.totalorder %s430_s22, %s602_s1 }
   0x6   :  { %p436_p2 = pnand %p434_p1, %p431_p0 }
   0x8   :  { %439 = shalt.err (!%p436_p2)
}
   0x9   :  { %s440_s27 = scalar_lea.vmem %s21_s19, 2048  ;;  %p445_p4 = scmp.lt.s32.totalorder %s21_s19, %s21_s19 }
   0xa   :  { %p441_p3 = scmp.ne.s32.totalorder %s21_s19, %s440_s27  ;;  %p446_p5 = scmp.lt.s32.totalorder %s440_s27, %s440_s27 }
   0xc   :  { %p447_p6 = por %p446_p5, %p445_p4 }
   0xe   :  { %p448_p7 = pnand %p447_p6, %p441_p3 }
  0x10   :  { %451 = shalt.err (!%p448_p7)
}
  0x11   :  { %s503_s28 = smov 128   ;;  %s504_s29 = smov 8  }
  0x12   :  { %26 = dma.hbm_to_vmem [thread:$0]  %s602_s1, 2048, %s21_s19, [#allocation3], %s503_s28, %s503_s28, %s504_s29  }
  0x13   :  { %s505_s7 = smov [#allocation5]   ;;  %s452_s11 = scalar_lea.hbm %s604_s3, 2048 }
  0x14   :  { %s34_s8 = sshll.u32 %s505_s7, 4  ;;  %p453_p8 = scmp.ne.s32.totalorder %s604_s3, %s452_s11  ;;  %s35_s8 = int_to_ptr.vmem [resolvable:$true] %s34_s8 }
  0x15   :  { %p456_p9 = scmp.lt.u32.totalorder %s452_s11, %s604_s3 }
  0x17   :  { %p458_p10 = pnand %p456_p9, %p453_p8 }
  0x19   :  { %461 = shalt.err (!%p458_p10)
}
  0x1a   :  { %s462_s16 = scalar_lea.vmem %s35_s8, 2048  ;;  %p467_p12 = scmp.lt.s32.totalorder %s35_s8, %s35_s8 }
  0x1b   :  { %p463_p11 = scmp.ne.s32.totalorder %s35_s8, %s462_s16  ;;  %p468_p13 = scmp.lt.s32.totalorder %s462_s16, %s462_s16 }
  0x1d   :  { %p469_p0 = por %p468_p13, %p467_p12 }
  0x1f   :  { %p470_p1 = pnand %p469_p0, %p463_p11 }
  0x21   :  { %473 = shalt.err (!%p470_p1)
}
  0x22   :  { %40 = dma.hbm_to_vmem [thread:$0]  %s604_s3, 2048, %s35_s8, [#allocation6], %s503_s28, %s503_s28, %s504_s29  }
  0x23   :  { %496 = dma.done.wait [#allocation3], 2048  }
  0x24   :  { %497 = vsyncadd [#allocation3], 4294965248 }
  0x25   :  { %498 = dma.done.wait [#allocation6], 2048  }
  0x26   :  { %499 = vsyncadd [#allocation6], 4294965248  ;;  %v506_v0 = vmov 0.0|0.0   ;;  %vm507_vm0 = vmmov 0   ;;  %v508_v1 = vmov 0.0   ;;  %v49_v2 = vld [vmem:[#allocation2] sm:$0xff] }
  0x27   :  { %370 = vmatprep.subr.bf16.mxu0 %v506_v0  ;;  %332 = vmatprep.mubr.msk.f32.mxu0 %vm507_vm0, %v508_v1  ;;  %v50_v3 = vld [vmem:[#allocation2 + $0x8] sm:$0xff]  ;;  %v51_v4 = vld [vmem:[#allocation2 + $0x10] sm:$0xff]  ;;  %v52_v6 = vld [vmem:[#allocation2 + $0x18] sm:$0xff] }
  0x28   :  { %394 = vmatprep.subr.bf16.mxu1 %v506_v0  ;;  %367 = vmatprep.mubr.msk.f32.mxu1 %vm507_vm0, %v508_v1  ;;  %v371_v5 = vpack.c.bf16 %v50_v3, %v49_v2  ;;  %v374_v7 = vpack.c.bf16 %v52_v6, %v51_v4  ;;  %v53_v8 = vld [vmem:[#allocation2 + $0x20] sm:$0xff]  ;;  %v54_v9 = vld [vmem:[#allocation2 + $0x28] sm:$0xff]  ;;  %v146_v12 = vld [vmem:[#allocation5 + $0x10] sm:$0xff] }
  0x29   :  { %v144_v10 = vld [vmem:[#allocation5] sm:$0xff]  ;;  %v145_v11 = vld [vmem:[#allocation5 + $0x8] sm:$0xff]  ;;  %v147_v13 = vld [vmem:[#allocation5 + $0x18] sm:$0xff]  ;;  %v377_v14 = vpack.c.bf16 %v54_v9, %v53_v8 }
  0x2a   :  { %372 = vmatpush3.bf16.msra.mxu0 %v371_v5  ;;  %v395_v15 = vpack.c.bf16 %v145_v11, %v144_v10  ;;  %v55_v16 = vld [vmem:[#allocation2 + $0x30] sm:$0xff]  ;;  %v56_v17 = vld [vmem:[#allocation2 + $0x38] sm:$0xff]  ;;  %v398_v18 = vpack.c.bf16 %v147_v13, %v146_v12  ;;  %v148_v19 = vld [vmem:[#allocation5 + $0x20] sm:$0xff] }
  0x2b   :  { %373 = vmatprep.subr.bf16.mxu0 %v506_v0  ;;  %v149_v20 = vld [vmem:[#allocation5 + $0x28] sm:$0xff]  ;;  %v380_v21 = vpack.c.bf16 %v56_v17, %v55_v16  ;;  %v57_v22 = vld [vmem:[#allocation2 + $0x40] sm:$0xff]  ;;  %v150_v25 = vld [vmem:[#allocation5 + $0x30] sm:$0xff] }
  0x2c   :  { %396 = vmatpush3.bf16.msra.mxu1 %v395_v15  ;;  %v58_v23 = vld [vmem:[#allocation2 + $0x48] sm:$0xff]  ;;  %v401_v24 = vpack.c.bf16 %v149_v20, %v148_v19  ;;  %v151_v26 = vld [vmem:[#allocation5 + $0x38] sm:$0xff]  ;;  %v59_v28 = vld [vmem:[#allocation2 + $0x50] sm:$0xff] }
  0x2d   :  { %397 = vmatprep.subr.bf16.mxu1 %v506_v0  ;;  %v383_v27 = vpack.c.bf16 %v58_v23, %v57_v22  ;;  %v60_v29 = vld [vmem:[#allocation2 + $0x58] sm:$0xff]  ;;  %v404_v30 = vpack.c.bf16 %v151_v26, %v150_v25  ;;  %v152_v31 = vld [vmem:[#allocation5 + $0x40] sm:$0xff]  ;;  %v153_v32 = vld [vmem:[#allocation5 + $0x48] sm:$0xff] }
  0x2e   :  { %375 = vmatpush3.bf16.msra.mxu0 %v374_v7  ;;  %v386_v33 = vpack.c.bf16 %v60_v29, %v59_v28  ;;  %v61_v34 = vld [vmem:[#allocation2 + $0x60] sm:$0xff]  ;;  %v62_v35 = vld [vmem:[#allocation2 + $0x68] sm:$0xff]  ;;  %v407_v36 = vpack.c.bf16 %v153_v32, %v152_v31  ;;  %v154_v37 = vld [vmem:[#allocation5 + $0x50] sm:$0xff] }
  0x2f   :  { %376 = vmatprep.subr.bf16.mxu0 %v506_v0  ;;  %v155_v38 = vld [vmem:[#allocation5 + $0x58] sm:$0xff]  ;;  %v389_v39 = vpack.c.bf16 %v62_v35, %v61_v34  ;;  %v63_v40 = vld [vmem:[#allocation2 + $0x70] sm:$0xff]  ;;  %v156_v43 = vld [vmem:[#allocation5 + $0x60] sm:$0xff] }
  0x30   :  { %399 = vmatpush3.bf16.msra.mxu1 %v398_v18  ;;  %v64_v41 = vld [vmem:[#allocation2 + $0x78] sm:$0xff]  ;;  %v410_v42 = vpack.c.bf16 %v155_v38, %v154_v37  ;;  %v157_v44 = vld [vmem:[#allocation5 + $0x68] sm:$0xff]  ;;  %v65_v47 = vld [vmem:[%s601_s0] sm:$0xff]  ;;  %s509_s0 = smov [#allocation7]  }
  0x31   :  { %400 = vmatprep.subr.bf16.mxu1 %v506_v0  ;;  %v392_v45 = vpack.c.bf16 %v64_v41, %v63_v40  ;;  %v413_v46 = vpack.c.bf16 %v157_v44, %v156_v43  ;;  %v158_v48 = vld [vmem:[#allocation5 + $0x70] sm:$0xff]  ;;  %v159_v49 = vld [vmem:[#allocation5 + $0x78] sm:$0xff]  ;;  %v264_v51 = vld [vmem:[%s603_s2] ss:$0 sm:$0xff]  ;;  %s254_s2 = sshll.u32 %s509_s0, 4  ;;  %s255_s2 = int_to_ptr.vmem [resolvable:$true] %s254_s2 }
  0x32   :  { %378 = vmatpush3.bf16.msra.mxu0 %v377_v14  ;;  %v416_v50 = vpack.c.bf16 %v159_v49, %v158_v48  ;;  %v265_v56 = vld [vmem:[%s605_s4] ss:$0 sm:$0xff]  ;;  %s474_s4 = scalar_lea.vmem %s255_s2, 128  ;;  %p479_p3 = scmp.lt.s32.totalorder %s255_s2, %s255_s2 }
  0x33   :  { %379 = vmatprep.subr.bf16.mxu0 %v506_v0  ;;  %p475_p2 = scmp.ne.s32.totalorder %s255_s2, %s474_s4  ;;  %p480_p4 = scmp.lt.s32.totalorder %s474_s4, %s474_s4 }
  0x34   :  { %402 = vmatpush3.bf16.msra.mxu1 %v401_v24 }
  0x35   :  { %403 = vmatprep.subr.bf16.mxu1 %v506_v0  ;;  %p481_p5 = por %p480_p4, %p479_p3 }
  0x36   :  { %381 = vmatpush3.bf16.msra.mxu0 %v380_v21 }
  0x37   :  { %382 = vmatprep.subr.bf16.mxu0 %v506_v0  ;;  %p482_p6 = pnand %p481_p5, %p475_p2 }
  0x38   :  { %405 = vmatpush3.bf16.msra.mxu1 %v404_v30 }
  0x39   :  { %406 = vmatprep.subr.bf16.mxu1 %v506_v0 }
  0x3a   :  { %384 = vmatpush3.bf16.msra.mxu0 %v383_v27 }
  0x3b   :  { %385 = vmatprep.subr.bf16.mxu0 %v506_v0 }
  0x3c   :  { %408 = vmatpush3.bf16.msra.mxu1 %v407_v36 }
  0x3d   :  { %409 = vmatprep.subr.bf16.mxu1 %v506_v0 }
  0x3e   :  { %387 = vmatpush3.bf16.msra.mxu0 %v386_v33 }
  0x3f   :  { %388 = vmatprep.subr.bf16.mxu0 %v506_v0 }
  0x40   :  { %411 = vmatpush3.bf16.msra.mxu1 %v410_v42 }
  0x41   :  { %412 = vmatprep.subr.bf16.mxu1 %v506_v0 }
  0x42   :  { %390 = vmatpush3.bf16.msra.mxu0 %v389_v39 }
  0x43   :  { %391 = vmatprep.subr.bf16.mxu0 %v506_v0 }
  0x44   :  { %414 = vmatpush3.bf16.msra.mxu1 %v413_v46 }
  0x45   :  { %415 = vmatprep.subr.bf16.mxu1 %v506_v0 }
  0x46   :  { %393 = vmatpush3.bf16.msra.mxu0 %v392_v45 }
  0x48   :  { %417 = vmatpush3.bf16.msra.mxu1 %v416_v50 }
  0x49   :  { %333 = vmatmul.mubr.f32.vlgmr.msra.gmra.mrb[0].mxu0 %v65_v47 }
 0x11c   :  { %v139_v52 = vpop.f32.mrb[0].mxu0 }
 0x11d   :  { %v140_v53 = vadd.f32 %v264_v51, %v139_v52  ;;  %v334_v54 = vpop.f32.mrb[1].mxu0 }
 0x11f   :  { %v143_v55 = vmax.f32 %v140_v53, 0.0 }
 0x121   :  { %368 = vmatmul.mubr.f32.vlgmr.msra.gmra.mrb[0].mxu1 %v143_v55 }
 0x1f4   :  { %v233_v57 = vpop.f32.mrb[0].mxu1 }
 0x1f5   :  { %v234_v58 = vadd.f32 %v265_v56, %v233_v57  ;;  %v369_v59 = vpop.f32.mrb[1].mxu1 }
 0x1f7   :  { %237 = vmax.xlane.f32.xlu0 %v234_v58 }
 0x284   :  { %v238_v60 = vpop.xlane.xlu0 %237 }
 0x285   :  { %v239_v61 = vsub.f32 %v234_v58, %v238_v60 }
 0x287   :  { %v240_v62 = vmul.f32 1.442695, %v239_v61 }
 0x289   :  { %426 = vpow2.f32 %v240_v62 }
 0x293   :  { %v427_v63 = vpop.eup %426 }
 0x294   :  { %242 = vadd.xlane.f32.xlu0 %v427_v63 }
 0x321   :  { %v243_v0 = vpop.xlane.xlu0 %242 }
 0x322   :  { %428 = vlog2.f32 %v243_v0 }
 0x32c   :  { %v429_v1 = vpop.eup %428 }
 0x32d   :  { %v245_v2 = vmul.f32 0.6931472, %v429_v1 }
 0x32f   :  { %v246_v3 = vsub.f32 %v239_v61, %v245_v2 }
 0x331   :  { %247 = vst [vmem:[#allocation7] sm:$0xff] %v246_v3 }
 0x332   :  { %485 = shalt.err (!%p482_p6)
}
 0x333   :  { %s486_s25 = scalar_lea.hbm %s606_s5, 128 }
 0x334   :  { %p487_p7 = scmp.ne.s32.totalorder %s606_s5, %s486_s25  ;;  %p490_p8 = scmp.lt.u32.totalorder %s486_s25, %s606_s5 }
 0x336   :  { %p492_p9 = pnand %p490_p8, %p487_p7 }
 0x338   :  { %495 = shalt.err (!%p492_p9)
}
 0x339   :  { %257 = dma.vmem_to_hbm [thread:$0]  %s255_s2, 128, %s606_s5, [#allocation4]  }
 0x33a   :  { %500 = dma.done.wait [#allocation4], 128  }
 0x33b   :  { %501 = vsyncadd [#allocation4], 4294967168 }
 0x33c   :  { %261 = vsyncpa [#allocation3], 1 }
 0x33d   :  { %262 = vsyncpa [#allocation6], 1 }
 0x33e   :  { %263 = vsyncpa [#allocation4], 1 }

</bundles_post_ra>
